<compile_context>
chip_gen: v7x
topology: tpu7x:2x2x1
jax: 0.10.0
libtpu: 0.0.40
codegen_flags: <defaults>
</compile_context>

<pallas_src>
import functools

import jax
import jax.numpy as jnp
from jax.experimental import pallas as pl
from jax.experimental.pallas import tpu as pltpu


def _round_up(x, m):
  return (x + m - 1) // m * m


def _chip_vmem_bytes():
  try:
    return int(pltpu.get_tpu_info().vmem_capacity_bytes)
  except Exception:
    return 64 * 1024 * 1024  # conservative fallback (v7x per-core VMEM)


def _score_kernel(zf_ref, w1bd_ref, b1_ref, acc_ref, *, n_rows, tile_n,
                  tiles_per_split):
  """Accumulate per-(metapath, hidden) tanh sums over the node axis.

  zf_ref:   (tile_n, M*D)  tile of z.reshape(N, M*D)
  w1bd_ref: (M*D, M*A)     block-diagonal kron(I_M, w1^T)
  b1_ref:   (1, M*A)       tile(b1, M)
  acc_ref:  (1, 1, M*A)    per-split resident accumulator:
                           acc[0,0,m*A+a] = sum_n tanh(z[n,m]·w1[a] + b1[a])
  """
  c = pl.program_id(0)
  i = pl.program_id(1)

  @pl.when(i == 0)
  def _init():
    acc_ref[...] = jnp.zeros_like(acc_ref)

  h = jnp.tanh(
      jnp.dot(zf_ref[...], w1bd_ref[...],
              preferred_element_type=jnp.float32,
              precision=jax.lax.Precision.HIGHEST)
      + b1_ref[...])                                        # (tile_n, M*A)

  # Mask rows past the true N (ragged last tile / clamped overhang steps).
  start = (c * tiles_per_split + i) * tile_n
  row_ids = jax.lax.broadcasted_iota(jnp.int32, (tile_n, 1), 0) + start
  h = jnp.where(row_ids < n_rows, h, 0.0)

  acc_ref[...] += jnp.sum(h, axis=0)[None, None, :]


def _weighted_sum_kernel(zf_ref, wb_ref, o_ref):
  """o_tile = zf_tile @ kron(beta, I_D)  ==  sum_m beta[m] * z[:, m, :]."""
  o_ref[...] = jnp.dot(zf_ref[...], wb_ref[...],
                       preferred_element_type=jnp.float32,
                       precision=jax.lax.Precision.HIGHEST
                       ).astype(o_ref.dtype)


def han_semantic_attention(z, w1, b1, w2, *,
                           vmem_budget_bytes=24 * 1024 * 1024):
  """z: (N, M, D); w1: (A, D); b1: (A,); w2: (1, A).  Returns (N, D) f32."""
  n, num_meta, in_dim = z.shape
  dim_a = w1.shape[0]
  assert w1.shape == (dim_a, in_dim)
  assert b1.shape == (dim_a,)
  assert w2.shape == (1, dim_a)

  md = num_meta * in_dim   # flattened metapath-major feature width
  ma = num_meta * dim_a    # flattened projection width

  z32 = jnp.asarray(z, jnp.float32)
  zf = z32.reshape(n, md)  # free view of the contiguous (N, M, D) array

  w1t = jnp.asarray(w1, jnp.float32).T                              # (D, A)
  w1_bd = jnp.kron(jnp.eye(num_meta, dtype=jnp.float32), w1t)       # (M*D, M*A)
  b1_t = jnp.tile(jnp.asarray(b1, jnp.float32), num_meta)[None, :]  # (1, M*A)
  w2_v = jnp.asarray(w2, jnp.float32)[0]                            # (A,)

  # --- node-tile sized from the VMEM budget only (no hard 1k-row cap).
  def lane(x):
    return _round_up(x, 128)
  row_bytes = 4 * (2 * lane(md)        # double-buffered zf tile (both passes)
                   + 2 * lane(in_dim)  # double-buffered pass-2 output tile
                   + 4 * lane(ma))     # pass-1 intermediates (h / tanh / mask)
  tile_n = vmem_budget_bytes // row_bytes
  tile_n = max(8, min(tile_n // 8 * 8, 8192, _round_up(n, 8)))

  tiles_total = -(-n // tile_n)
  num_splits = 2 if tiles_total >= 2 else 1   # v7x: one partial per TensorCore
  tiles_per_split = -(-tiles_total // num_splits)
  last_block = tiles_total - 1

  vmem_limit = int(min(_chip_vmem_bytes() - 8 * 1024 * 1024,
                       vmem_budget_bytes + 16 * 1024 * 1024))
  vmem_limit = max(vmem_limit, 16 * 1024 * 1024)

  # ---- Pass 1: per-(metapath, hidden) tanh sums over N, split across cores.
  def z_map(c, i):
    # Clamp so an overhang step (odd tile count with 2 splits) re-reads the
    # last valid tile; its contribution is zeroed by the in-kernel row mask.
    return (jnp.minimum(c * tiles_per_split + i, last_block), 0)

  partials = pl.pallas_call(
      functools.partial(_score_kernel, n_rows=n, tile_n=tile_n,
                        tiles_per_split=tiles_per_split),
      out_shape=jax.ShapeDtypeStruct((num_splits, 1, ma), jnp.float32),
      grid_spec=pltpu.PrefetchScalarGridSpec(
          num_scalar_prefetch=0,
          grid=(num_splits, tiles_per_split),
          in_specs=[
              pl.BlockSpec((tile_n, md), z_map),
              pl.BlockSpec((md, ma), lambda c, i: (0, 0)),
              pl.BlockSpec((1, ma), lambda c, i: (0, 0)),
          ],
          out_specs=pl.BlockSpec((1, 1, ma), lambda c, i: (c, 0, 0)),
      ),
      compiler_params=pltpu.CompilerParams(
          dimension_semantics=("parallel", "arbitrary"),
          vmem_limit_bytes=vmem_limit),
  )(zf, w1_bd, b1_t)

  # ---- Tiny semantic softmax over metapaths in plain JAX.
  t_sum = partials.sum(axis=(0, 1)).reshape(num_meta, dim_a)   # (M, A)
  scores = t_sum @ w2_v                                        # (M,)
  beta = jax.nn.softmax(scores / jnp.float32(n), axis=0)       # (M,)

  # Fold beta into a stacked-identity (M*D, D) matrix so pass 2 is one MXU
  # matmul per tile: zf @ kron(beta, I_D) == sum_m beta[m] * z[:, m, :].
  w_beta = jnp.kron(beta[:, None], jnp.eye(in_dim, dtype=jnp.float32))

  # ---- Pass 2: beta-weighted metapath sum over independent node tiles.
  out = pl.pallas_call(
      _weighted_sum_kernel,
      out_shape=jax.ShapeDtypeStruct((n, in_dim), jnp.float32),
      grid_spec=pltpu.PrefetchScalarGridSpec(
          num_scalar_prefetch=0,
          grid=(tiles_total,),
          in_specs=[
              pl.BlockSpec((tile_n, md), lambda i: (i, 0)),
              pl.BlockSpec((md, in_dim), lambda i: (0, 0)),
          ],
          out_specs=pl.BlockSpec((tile_n, in_dim), lambda i: (i, 0)),
      ),
      compiler_params=pltpu.CompilerParams(
          dimension_semantics=("parallel",),
          vmem_limit_bytes=vmem_limit),
  )(zf, w_beta)

  return out


def _reference(z, w1, b1, w2):
  # Pure-JAX reference mirroring the PyTorch module.
  h = jnp.tanh(jnp.einsum("nmd,ad->nma", z, w1) + b1)      # (N, M, A)
  s = jnp.einsum("nma,oa->nmo", h, w2)                     # (N, M, 1)
  w = jnp.mean(s, axis=0)                                  # (M, 1)
  beta = jax.nn.softmax(w, axis=0)                         # (M, 1)
  return jnp.sum(beta[None, :, :] * z, axis=1)             # (N, D)


if __name__ == "__main__":
  # Small shapes: N=16 nodes, M=4 metapaths, in_dim=32, dim_a=8.
  N, M, IN_DIM, DIM_A = 16, 4, 32, 8

  key = jax.random.PRNGKey(0)
  kz, kw1, kb1, kw2 = jax.random.split(key, 4)
  z = jax.random.normal(kz, (N, M, IN_DIM), dtype=jnp.float32)
  # Deterministic synthetic parameters (shapes from nn.Linear in __init__).
  w1 = jax.random.normal(kw1, (DIM_A, IN_DIM), dtype=jnp.float32) * 0.1
  b1 = jax.random.normal(kb1, (DIM_A,), dtype=jnp.float32) * 0.1
  w2 = jax.random.normal(kw2, (1, DIM_A), dtype=jnp.float32) * 0.1

  out = jax.jit(han_semantic_attention)(z, w1, b1, w2)
  out = jax.block_until_ready(out)

  ref = _reference(z, w1, b1, w2)
  assert out.shape == (N, IN_DIM)
  assert jnp.allclose(out, ref, rtol=1e-3, atol=1e-3), "mismatch vs reference"

  print("KERNEL_OK")
</pallas_src>

<mosaic_0001>
module attributes {stable_mosaic.version = 11 : i64} {
  func.func @_score_kernel(%arg0: i32, %arg1: i32, %arg2: memref<16x128xf32, #tpu.memory_space<vmem>>, %arg3: memref<128x32xf32, #tpu.memory_space<vmem>>, %arg4: memref<1x32xf32, #tpu.memory_space<vmem>>, %arg5: memref<1x1x32xf32, #tpu.memory_space<vmem>>) attributes {dimension_semantics = [#tpu.dimension_semantics<parallel>, #tpu.dimension_semantics<arbitrary>], iteration_bounds = array<i64: 1, 1>, scalar_prefetch = 0 : i64, scratch_operands = 0 : i64, tpu.core_type = #tpu.core_type<tc>, window_params = [{transform_indices = @transform_0, window_bounds = array<i64: 16, 128>}, {pipeline_mode = #tpu.pipeline_mode<synchronous>, transform_indices = @transform_1, window_bounds = array<i64: 128, 32>}, {pipeline_mode = #tpu.pipeline_mode<synchronous>, transform_indices = @transform_2, window_bounds = array<i64: 1, 32>}, {transform_indices = @transform_3, window_bounds = array<i64: 1, 1, 32>}]} {
    %c0_i32 = arith.constant 0 : i32
    %0 = arith.cmpi eq, %arg1, %c0_i32 : i32
    %1 = arith.extui %0 : i1 to i32
    %c0_i32_0 = arith.constant 0 : i32
    %2 = arith.cmpi ne, %1, %c0_i32_0 : i32
    scf.if %2 {
      %cst_15 = arith.constant 0.000000e+00 : f32
      %27 = vector.broadcast %cst_15 : f32 to vector<1x1x32xf32>
      %c0_16 = arith.constant 0 : index
      %c0_17 = arith.constant 0 : index
      %c0_18 = arith.constant 0 : index
      %28 = vector.load %arg5[%c0_16, %c0_17, %c0_18] : memref<1x1x32xf32, #tpu.memory_space<vmem>>, vector<1x1x32xf32>
      tpu.vector_store %arg5[%c0_16, %c0_17, %c0_18], %27 {strides = array<i32>} : memref<1x1x32xf32, #tpu.memory_space<vmem>>, vector<1x1x32xf32>,
    } else {
    }
    %c0 = arith.constant 0 : index
    %c0_1 = arith.constant 0 : index
    %3 = vector.load %arg2[%c0, %c0_1] : memref<16x128xf32, #tpu.memory_space<vmem>>, vector<16x128xf32>
    %c0_2 = arith.constant 0 : index
    %c0_3 = arith.constant 0 : index
    %4 = vector.load %arg3[%c0_2, %c0_3] : memref<128x32xf32, #tpu.memory_space<vmem>>, vector<128x32xf32>
    %cst = arith.constant dense<0.000000e+00> : vector<16x32xf32>
    %5 = tpu.matmul %3, %4, %cst {dimension_numbers = #tpu.dot_dimension_numbers<[1], [0], [0], [1], [0, 0, 1, 1], [], []>, precision = #tpu.contract_precision<fp32>} : vector<16x128xf32>, vector<128x32xf32>, vector<16x32xf32> -> vector<16x32xf32>
    %c0_4 = arith.constant 0 : index
    %c0_5 = arith.constant 0 : index
    %6 = vector.load %arg4[%c0_4, %c0_5] : memref<1x32xf32, #tpu.memory_space<vmem>>, vector<1x32xf32>
    %7 = vector.broadcast %6 : vector<1x32xf32> to vector<16x32xf32>
    %8 = arith.addf %5, %7 : vector<16x32xf32>
    %9 = math.tanh %8 : vector<16x32xf32>
    %c1_i32 = arith.constant 1 : i32
    %10 = arith.muli %arg0, %c1_i32 : i32
    %11 = arith.addi %10, %arg1 : i32
    %c16_i32 = arith.constant 16 : i32
    %12 = arith.muli %11, %c16_i32 : i32
    %13 = tpu.iota {dimensions = array<i32: 0>} : vector<16x1xi32>
    %14 = vector.broadcast %12 : i32 to vector<16x1xi32>
    %15 = arith.addi %13, %14 : vector<16x1xi32>
    %c16_i32_6 = arith.constant 16 : i32
    %16 = vector.broadcast %c16_i32_6 : i32 to vector<16x1xi32>
    %17 = arith.cmpi slt, %15, %16 : vector<16x1xi32>
    %cst_7 = arith.constant 0.000000e+00 : f32
    %18 = vector.shape_cast %17 : vector<16x1xi1> to vector<16x1xi1>
    %19 = vector.broadcast %18 : vector<16x1xi1> to vector<16x32xi1>
    %20 = vector.broadcast %cst_7 : f32 to vector<16x32xf32>
    %21 = arith.select %19, %9, %20 : vector<16x32xi1>, vector<16x32xf32>
    %c0_8 = arith.constant 0 : index
    %c0_9 = arith.constant 0 : index
    %c0_10 = arith.constant 0 : index
    %22 = vector.load %arg5[%c0_8, %c0_9, %c0_10] : memref<1x1x32xf32, #tpu.memory_space<vmem>>, vector<1x1x32xf32>
    %cst_11 = arith.constant dense<0.000000e+00> : vector<32xf32>
    %23 = vector.multi_reduction <add>, %21, %cst_11 [0] : vector<16x32xf32> to vector<32xf32>
    %24 = vector.shape_cast %23 : vector<32xf32> to vector<1x1x32xf32>
    %25 = arith.addf %22, %24 : vector<1x1x32xf32>
    %c0_12 = arith.constant 0 : index
    %c0_13 = arith.constant 0 : index
    %c0_14 = arith.constant 0 : index
    %26 = vector.load %arg5[%c0_12, %c0_13, %c0_14] : memref<1x1x32xf32, #tpu.memory_space<vmem>>, vector<1x1x32xf32>
    tpu.vector_store %arg5[%c0_12, %c0_13, %c0_14], %25 {strides = array<i32>} : memref<1x1x32xf32, #tpu.memory_space<vmem>>, vector<1x1x32xf32>,
    return
  }
  func.func @transform_0(%arg0: i32, %arg1: i32) -> (i32, i32) {
    %c1_i32 = arith.constant 1 : i32
    %0 = arith.muli %arg0, %c1_i32 : i32
    %1 = arith.addi %0, %arg1 : i32
    %c0_i32 = arith.constant 0 : i32
    %2 = arith.minsi %1, %c0_i32 : i32
    %c0_i32_0 = arith.constant 0 : i32
    %c0_i32_1 = arith.constant 0 : i32
    return %2, %c0_i32_0 : i32, i32
  }
  func.func @transform_1(%arg0: i32, %arg1: i32) -> (i32, i32) {
    %c0_i32 = arith.constant 0 : i32
    %c0_i32_0 = arith.constant 0 : i32
    %c0_i32_1 = arith.constant 0 : i32
    return %c0_i32, %c0_i32_0 : i32, i32
  }
  func.func @transform_2(%arg0: i32, %arg1: i32) -> (i32, i32) {
    %c0_i32 = arith.constant 0 : i32
    %c0_i32_0 = arith.constant 0 : i32
    %c0_i32_1 = arith.constant 0 : i32
    return %c0_i32, %c0_i32_0 : i32, i32
  }
  func.func @transform_3(%arg0: i32, %arg1: i32) -> (i32, i32, i32) {
    %c0_i32 = arith.constant 0 : i32
    %c0_i32_0 = arith.constant 0 : i32
    %c0_i32_1 = arith.constant 0 : i32
    return %arg0, %c0_i32, %c0_i32_0 : i32, i32, i32
  }
}

module attributes {stable_mosaic.version = 11 : i64} {
  func.func @_weighted_sum_kernel(%arg0: i32, %arg1: memref<16x128xf32, #tpu.memory_space<vmem>>, %arg2: memref<128x32xf32, #tpu.memory_space<vmem>>, %arg3: memref<16x32xf32, #tpu.memory_space<vmem>>) attributes {dimension_semantics = [#tpu.dimension_semantics<parallel>], iteration_bounds = array<i64: 1>, scalar_prefetch = 0 : i64, scratch_operands = 0 : i64, tpu.core_type = #tpu.core_type<tc>, window_params = [{transform_indices = @transform_0, window_bounds = array<i64: 16, 128>}, {pipeline_mode = #tpu.pipeline_mode<synchronous>, transform_indices = @transform_1, window_bounds = array<i64: 128, 32>}, {transform_indices = @transform_2, window_bounds = array<i64: 16, 32>}]} {
    %c0 = arith.constant 0 : index
    %c0_0 = arith.constant 0 : index
    %0 = vector.load %arg1[%c0, %c0_0] : memref<16x128xf32, #tpu.memory_space<vmem>>, vector<16x128xf32>
    %c0_1 = arith.constant 0 : index
    %c0_2 = arith.constant 0 : index
    %1 = vector.load %arg2[%c0_1, %c0_2] : memref<128x32xf32, #tpu.memory_space<vmem>>, vector<128x32xf32>
    %cst = arith.constant dense<0.000000e+00> : vector<16x32xf32>
    %2 = tpu.matmul %0, %1, %cst {dimension_numbers = #tpu.dot_dimension_numbers<[1], [0], [0], [1], [0, 0, 1, 1], [], []>, precision = #tpu.contract_precision<fp32>} : vector<16x128xf32>, vector<128x32xf32>, vector<16x32xf32> -> vector<16x32xf32>
    %c0_3 = arith.constant 0 : index
    %c0_4 = arith.constant 0 : index
    %3 = vector.load %arg3[%c0_3, %c0_4] : memref<16x32xf32, #tpu.memory_space<vmem>>, vector<16x32xf32>
    tpu.vector_store %arg3[%c0_3, %c0_4], %2 {strides = array<i32>} : memref<16x32xf32, #tpu.memory_space<vmem>>, vector<16x32xf32>,
    return
  }
  func.func @transform_0(%arg0: i32) -> (i32, i32) {
    %c0_i32 = arith.constant 0 : i32
    %c0_i32_0 = arith.constant 0 : i32
    return %arg0, %c0_i32 : i32, i32
  }
  func.func @transform_1(%arg0: i32) -> (i32, i32) {
    %c0_i32 = arith.constant 0 : i32
    %c0_i32_0 = arith.constant 0 : i32
    %c0_i32_1 = arith.constant 0 : i32
    return %c0_i32, %c0_i32_0 : i32, i32
  }
  func.func @transform_2(%arg0: i32) -> (i32, i32) {
    %c0_i32 = arith.constant 0 : i32
    %c0_i32_0 = arith.constant 0 : i32
    return %arg0, %c0_i32 : i32, i32
  }
}

</mosaic_0001>

<bundles_post_ra>
// kernel: tile.9
= control target key start
LH: loop header
LB: loop body
LE: loop exit
PB: predicated region body
PF: predicated region fallthrough
CT: control target
= control target key end

     0   :  { %vm7_vm0 = vcmask 64512   ;;  %s37_s8 = smov 8   ;;  %s38_s9 = smov 16   ;;  %vm13_vm1 = vcmask 261312   ;;  %vm19_vm2 = vcmask 195712   ;;  %vm25_vm3 = vcmask 130112   ;;  %s55_s0 = inlined_call_operand.vmem [shape: f32[4,8], index: 0, kind: input, shape index: {}]   ;;  %s56_s1 = inlined_call_operand.vmem [shape: f32[1,32], index: 1, kind: output, shape index: {}]  }
   0x1   :  { %v4_v0 = vld [vmem:[%s55_s0] sm:$0xf]  ;;  %s36_s0 = smov 24  }
   0x2   :  { %5 = vst [vmem:[#allocation1] sm:$0xf] %v4_v0 }
   0x9   :  { %v10_v1 = vld [vmem:[#allocation1 + $0x3] sm:$0x1]   ;;  %v22_v2 = vld [vmem:[#allocation1 + $0x1] sm:$0x1]   ;;  %v6_v3 = vld [vmem:[#allocation1] sm:$0x1]  }
   0xa   :  { %11 = vrot.lane.b32.xlu0 %v10_v1, %s36_s0  ;;  %23 = vrot.lane.b32.xlu1 %v22_v2, %s37_s8  ;;  %v16_v4 = vld [vmem:[#allocation1 + $0x2] sm:$0x1]   ;;  %8 = vst.msk [vmem:[#allocation0] sm:$0x1] %vm7_vm0, %v6_v3  }
   0xe   :  { %17 = vrot.lane.b32.xlu0 %v16_v4, %s38_s9 }
  0x7c   :  { %v12_v5 = vpop.permute.xlu0 %11   ;;  %v24_v6 = vpop.permute.xlu1 %23  }
  0x7d   :  { %14 = vst.msk [vmem:[#allocation0] sm:$0x1] %vm13_vm1, %v12_v5  }
  0x80   :  { %v18_v7 = vpop.permute.xlu0 %17  }
  0x81   :  { %20 = vst.msk [vmem:[#allocation0] sm:$0x1] %vm19_vm2, %v18_v7  }
  0x82   :  { %26 = vst.msk [vmem:[#allocation0] sm:$0x1] %vm25_vm3, %v24_v6  }
  0x89   :  { %v30_v8 = vld [vmem:[#allocation0] sm:$0x1] }
  0x8a   :  { %32 = vst [vmem:[%s56_s1] sm:$0x1] %v30_v8 }

// kernel: tile.8
= control target key start
LH: loop header
LB: loop body
LE: loop exit
PB: predicated region body
PF: predicated region fallthrough
CT: control target
= control target key end

     0   :  { %s22_s0 = inlined_call_operand.vmem [shape: f32[8], index: 0, kind: input, shape index: {}]   ;;  %s23_s1 = inlined_call_operand.vmem [shape: f32[4,8], index: 1, kind: output, shape index: {}]  }
   0x1   :  { %v4_v0 = vld [vmem:[%s22_s0] ss:$0 sm:$0xff] }
   0x2   :  { %5 = vst [vmem:[%s23_s1] sm:$0xf] %v4_v0 }

// kernel: han_semantic_attention.2
= control target key start
LH: loop header
LB: loop body
LE: loop exit
PB: predicated region body
PF: predicated region fallthrough
CT: control target
= control target key end

     0   :  { %vm50_vm0 = vcmask 253952   ;;  %vm780_vm1 = vcmask 261120   ;;  %s1686_s1 = inlined_call_operand.vmem [shape: f32[128,32], index: 1, kind: input, shape index: {}]   ;;  %s1687_s0 = inlined_call_operand.vmem [shape: f32[16,128], index: 0, kind: input, shape index: {}]   ;;  %s1688_s3 = inlined_call_operand.vmem [shape: f32[1,1,32], index: 3, kind: output, shape index: {}]   ;;  %s1689_s2 = inlined_call_operand.vmem [shape: f32[1,32], index: 2, kind: input, shape index: {}]  }
   0x1   :  { %v54_v0 = vld [vmem:[%s1686_s1] sm:$0xff]  ;;  %v55_v1 = vld [vmem:[%s1686_s1 + $0x8] sm:$0xff]  ;;  %v56_v2 = vld [vmem:[%s1686_s1 + $0x10] sm:$0xff] }
   0x2   :  { %v78_v3 = vand.u32 4294901760, %v54_v0  ;;  %v81_v4 = vand.u32 4294901760, %v55_v1  ;;  %v1364_v5 = vld [vmem:[%s1686_s1 + $0x18] sm:$0xff]  ;;  %v84_v6 = vand.u32 4294901760, %v56_v2  ;;  %v1369_v7 = vld [vmem:[%s1686_s1 + $0x20] sm:$0xff]  ;;  %v1374_v8 = vld [vmem:[%s1686_s1 + $0x28] sm:$0xff] }
   0x3   :  { %v87_v9 = vand.u32 4294901760, %v1364_v5  ;;  %v90_v11 = vand.u32 4294901760, %v1369_v7  ;;  %v93_v12 = vand.u32 4294901760, %v1374_v8  ;;  %v1386_v14 = vld [vmem:[%s1686_s1 + $0x30] sm:$0xff]  ;;  %v1391_v15 = vld [vmem:[%s1686_s1 + $0x38] sm:$0xff]  ;;  %v52_v16 = vld [vmem:[%s1687_s0] sm:$0xff] }
   0x4   :  { %v1377_v10 = vpack.c.bf16 %v81_v4, %v78_v3  ;;  %v1400_v17 = vand.u32 4294901760, %v52_v16  ;;  %v96_v19 = vand.u32 4294901760, %v1386_v14  ;;  %v99_v20 = vand.u32 4294901760, %v1391_v15  ;;  %v1415_v21 = vld [vmem:[%s1686_s1 + $0x40] sm:$0xff]  ;;  %v1420_v22 = vld [vmem:[%s1686_s1 + $0x48] sm:$0xff]  ;;  %v1441_v28 = vld [vmem:[%s1686_s1 + $0x50] sm:$0xff] }
   0x5   :  { %v1381_v13 = vpack.c.bf16 %v87_v9, %v84_v6  ;;  %v1408_v18 = vpack.c.bf16 %v93_v12, %v90_v11  ;;  %v102_v26 = vand.u32 4294901760, %v1415_v21  ;;  %v105_v27 = vand.u32 4294901760, %v1420_v22  ;;  %v1446_v29 = vld [vmem:[%s1686_s1 + $0x58] sm:$0xff]  ;;  %v53_v32 = vld [vmem:[%s1687_s0 + $0x8] sm:$0xff]  ;;  %v1467_v36 = vld [vmem:[%s1686_s1 + $0x60] sm:$0xff] }
   0x6   :  { %1123 = vmatprep.subr.bf16.mxu1 %v1377_v10  ;;  %1219 = vmatprep.subr.bf16.mxu0 %v1377_v10  ;;  %v1423_v23 = vsub.f32 %v52_v16, %v1400_v17  ;;  %v1434_v25 = vpack.c.bf16 %v99_v20, %v96_v19  ;;  %v108_v31 = vand.u32 4294901760, %v1441_v28  ;;  %v111_v35 = vand.u32 4294901760, %v1446_v29  ;;  %v1472_v37 = vld [vmem:[%s1686_s1 + $0x68] sm:$0xff]  ;;  %v1487_v43 = vld [vmem:[%s1686_s1 + $0x70] sm:$0xff]  ;;  %v1492_v44 = vld [vmem:[%s1686_s1 + $0x78] sm:$0xff] }
   0x7   :  { %1125 = vmatpush3.bf16.msra.mxu1 %v1377_v10  ;;  %1221 = vmatpush3.bf16.msra.mxu0 %v1377_v10  ;;  %v1461_v34 = vpack.c.bf16 %v105_v27, %v102_v26  ;;  %v1474_v38 = vsub.f32 %v54_v0, %v78_v3  ;;  %v1476_v39 = vsub.f32 %v55_v1, %v81_v4  ;;  %v1478_v40 = vand.u32 4294901760, %v53_v32 }
   0x8   :  { %1127 = vmatprep.subr.bf16.mxu1 %v1381_v13  ;;  %1223 = vmatprep.subr.bf16.mxu0 %v1381_v13  ;;  %v160_v24 = vand.u32 4294901760, %v1423_v23  ;;  %v114_v41 = vand.u32 4294901760, %v1467_v36  ;;  %v117_v42 = vand.u32 4294901760, %v1472_v37  ;;  %v1494_v45 = vsub.f32 %v56_v2, %v84_v6 }
   0x9   :  { %v1502_v46 = vpack.c.bf16 %v111_v35, %v108_v31  ;;  %v181_v47 = vand.u32 4294901760, %v1474_v38  ;;  %v188_v48 = vand.u32 4294901760, %v1476_v39  ;;  %v1507_v49 = vsub.f32 %v1364_v5, %v87_v9 }
   0xa   :  { %v161_v30 = vsub.f32 %v1423_v23, %v160_v24  ;;  %1049 = vmatprep.mubr.f32.mxu0 %v160_v24  ;;  %v120_v50 = vand.u32 4294901760, %v1487_v43  ;;  %v123_v51 = vand.u32 4294901760, %v1492_v44  ;;  %v1512_v52 = vsub.f32 %v53_v32, %v1478_v40 }
   0xb   :  { %1129 = vmatpush3.bf16.msra.mxu1 %v1381_v13  ;;  %1225 = vmatpush3.bf16.msra.mxu0 %v1381_v13  ;;  %v1520_v53 = vpack.c.bf16 %v117_v42, %v114_v41  ;;  %v195_v54 = vand.u32 4294901760, %v1494_v45  ;;  %v1526_v55 = vsub.f32 %v1369_v7, %v90_v11  ;;  %v182_v56 = vsub.f32 %v1474_v38, %v181_v47 }
   0xc   :  { %1131 = vmatprep.subr.bf16.mxu1 %v1408_v18  ;;  %1227 = vmatprep.subr.bf16.mxu0 %v1408_v18  ;;  %v162_v33 = vand.u32 4294901760, %v161_v30  ;;  %v189_v57 = vsub.f32 %v1476_v39, %v188_v48  ;;  %v202_v58 = vand.u32 4294901760, %v1507_v49  ;;  %v1536_v59 = vsub.f32 %v1374_v8, %v93_v12 }
   0xd   :  { %v1542_v60 = vpack.c.bf16 %v123_v51, %v120_v50  ;;  %v170_v61 = vand.u32 4294901760, %v1512_v52  ;;  %v196_v62 = vsub.f32 %v1494_v45, %v195_v54  ;;  %v209_v63 = vand.u32 4294901760, %v1526_v55 }
   0xe   :  { %944 = vmatprep.mubr.f32.mxu1 %v162_v33  ;;  %v1552_v0 = vsub.f32 %v1386_v14, %v96_v19  ;;  %v1557_v1 = vsub.f32 %v1391_v15, %v99_v20  ;;  %v183_v2 = vand.u32 4294901760, %v182_v56  ;;  %v190_v3 = vand.u32 4294901760, %v189_v57 }
   0xf   :  { %1133 = vmatpush3.bf16.msra.mxu1 %v1408_v18  ;;  %1229 = vmatpush3.bf16.msra.mxu0 %v1408_v18  ;;  %v203_v4 = vsub.f32 %v1507_v49, %v202_v58  ;;  %v216_v5 = vand.u32 4294901760, %v1536_v59  ;;  %v1250_v6 = vpack.c.bf16 %v188_v48, %v181_v47  ;;  %v171_v7 = vsub.f32 %v1512_v52, %v170_v61 }
  0x10   :  { %1135 = vmatprep.subr.bf16.mxu1 %v1434_v25  ;;  %1231 = vmatprep.subr.bf16.mxu0 %v1434_v25  ;;  %v1567_v8 = vsub.f32 %v1415_v21, %v102_v26  ;;  %v197_v9 = vand.u32 4294901760, %v196_v62  ;;  %v210_v11 = vsub.f32 %v1526_v55, %v209_v63  ;;  %v223_v12 = vand.u32 4294901760, %v1552_v0 }
  0x11   :  { %v230_v14 = vand.u32 4294901760, %v1557_v1  ;;  %v1154_v15 = vpack.c.bf16 %v190_v3, %v183_v2  ;;  %v204_v16 = vand.u32 4294901760, %v203_v4  ;;  %v217_v19 = vsub.f32 %v1536_v59, %v216_v5 }
  0x12   :  { %v1580_v20 = vsub.f32 %v1420_v22, %v105_v27  ;;  %v172_v21 = vand.u32 4294901760, %v171_v7  ;;  %v1254_v24 = vpack.c.bf16 %v202_v58, %v195_v54  ;;  %v237_v26 = vand.u32 4294901760, %v1567_v8 }
  0x13   :  { %1137 = vmatpush3.bf16.msra.mxu1 %v1434_v25  ;;  %1233 = vmatpush3.bf16.msra.mxu0 %v1434_v25  ;;  %v1586_v30 = vsub.f32 %v1441_v28, %v108_v31  ;;  %v224_v32 = vsub.f32 %v1552_v0, %v223_v12  ;;  %v231_v33 = vsub.f32 %v1557_v1, %v230_v14  ;;  %v211_v47 = vand.u32 4294901760, %v210_v11 }
  0x14   :  { %1139 = vmatprep.subr.bf16.mxu1 %v1461_v34  ;;  %1235 = vmatprep.subr.bf16.mxu0 %v1461_v34  ;;  %v1595_v22 = vsub.f32 %v1446_v29, %v111_v35  ;;  %v1158_v27 = vpack.c.bf16 %v204_v16, %v197_v9  ;;  %v218_v48 = vand.u32 4294901760, %v217_v19  ;;  %v244_v28 = vand.u32 4294901760, %v1580_v20 }
  0x15   :  { %v1258_v31 = vpack.c.bf16 %v216_v5, %v209_v63  ;;  %v238_v54 = vsub.f32 %v1567_v8, %v237_v26  ;;  %v1602_v56 = vsub.f32 %v1467_v36, %v114_v41  ;;  %v225_v29 = vand.u32 4294901760, %v224_v32 }
  0x16   :  { %v232_v35 = vand.u32 4294901760, %v231_v33  ;;  %v251_v57 = vand.u32 4294901760, %v1586_v30  ;;  %v258_v58 = vand.u32 4294901760, %v1595_v22  ;;  %v1162_v62 = vpack.c.bf16 %v218_v48, %v211_v47 }
  0x17   :  { %1141 = vmatpush3.bf16.msra.mxu1 %v1461_v34  ;;  %1237 = vmatpush3.bf16.msra.mxu0 %v1461_v34  ;;  %v1610_v63 = vsub.f32 %v1472_v37, %v117_v42  ;;  %v1262_v36 = vpack.c.bf16 %v230_v14, %v223_v12  ;;  %v239_v41 = vand.u32 4294901760, %v238_v54  ;;  %v265_v5 = vand.u32 4294901760, %v1602_v56 }
  0x18   :  { %1143 = vmatprep.subr.bf16.mxu1 %v1502_v46  ;;  %1239 = vmatprep.subr.bf16.mxu0 %v1502_v46  ;;  %v1166_v2 = vpack.c.bf16 %v232_v35, %v225_v29  ;;  %v252_v3 = vsub.f32 %v1586_v30, %v251_v57  ;;  %v259_v4 = vsub.f32 %v1595_v22, %v258_v58 }
  0x19   :  { %v272_v37 = vand.u32 4294901760, %v1610_v63  ;;  %v1621_v42 = vsub.f32 %v1487_v43, %v120_v50  ;;  %v1626_v7 = vsub.f32 %v1492_v44, %v123_v51  ;;  %v1266_v9 = vpack.c.bf16 %v244_v28, %v237_v26 }
  0x1a   :  { %v253_v11 = vand.u32 4294901760, %v252_v3  ;;  %v260_v12 = vand.u32 4294901760, %v259_v4  ;;  %v266_v14 = vsub.f32 %v1602_v56, %v265_v5  ;;  %v1270_v51 = vpack.c.bf16 %v258_v58, %v251_v57 }
  0x1b   :  { %1145 = vmatpush3.bf16.msra.mxu1 %v1502_v46  ;;  %1241 = vmatpush3.bf16.msra.mxu0 %v1502_v46  ;;  %v273_v16 = vsub.f32 %v1610_v63, %v272_v37  ;;  %v279_v43 = vand.u32 4294901760, %v1621_v42  ;;  %v286_v50 = vand.u32 4294901760, %v1626_v7  ;;  %v1274_v33 = vpack.c.bf16 %v272_v37, %v265_v5 }
  0x1c   :  { %1147 = vmatprep.subr.bf16.mxu1 %v1520_v53  ;;  %1243 = vmatprep.subr.bf16.mxu0 %v1520_v53  ;;  %v1174_v44 = vpack.c.bf16 %v260_v12, %v253_v11  ;;  %v267_v19 = vand.u32 4294901760, %v266_v14  ;;  %v1190_v54 = vpack.c.bf16 %v1507_v49, %v1494_v45 }
  0x1d   :  { %v287_v26 = vsub.f32 %v1626_v7, %v286_v50 }
  0x1f   :  { %1149 = vmatpush3.bf16.msra.mxu1 %v1520_v53  ;;  %1245 = vmatpush3.bf16.msra.mxu0 %v1520_v53  ;;  %v288_v47 = vand.u32 4294901760, %v287_v26 }
  0x20   :  { %1151 = vmatprep.subr.bf16.mxu1 %v1542_v60  ;;  %1247 = vmatprep.subr.bf16.mxu0 %v1542_v60 }
  0x23   :  { %1153 = vmatpush3.bf16.msra.mxu1 %v1542_v60  ;;  %1249 = vmatpush3.bf16.msra.mxu0 %v1542_v60 }
  0x24   :  { %1155 = vmatprep.subr.bf16.mxu1 %v1154_v15  ;;  %1251 = vmatprep.subr.bf16.mxu0 %v1250_v6 }
  0x26   :  { %945 = vmatmul.mubr.f32.vlgmr.msra.gmra.mrb[0].mxu1 %v172_v21  ;;  %1050 = vmatmul.mubr.f32.vlgmr.msra.gmra.mrb[0].mxu0 %v170_v61  ;;  %v245_v61 = vsub.f32 %v1580_v20, %v244_v28  ;;  %v274_v21 = vand.u32 4294901760, %v273_v16  ;;  %v1278_v28 = vpack.c.bf16 %v286_v50, %v279_v43 }
  0x27   :  { %1157 = vmatpush3.bf16.msra.mxu1 %v1154_v15  ;;  %1253 = vmatpush3.bf16.msra.mxu0 %v1250_v6 }
  0x28   :  { %1159 = vmatprep.subr.bf16.mxu1 %v1158_v27  ;;  %1255 = vmatprep.subr.bf16.mxu0 %v1254_v24  ;;  %v246_v6 = vand.u32 4294901760, %v245_v61  ;;  %v1178_v32 = vpack.c.bf16 %v274_v21, %v267_v19 }
  0x29   :  { %979 = vmatprep.mubr.f32.mxu1 %v1400_v17  ;;  %1084 = vmatprep.mubr.f32.mxu0 %v1400_v17 }
  0x2a   :  { %v1170_v15 = vpack.c.bf16 %v246_v6, %v239_v41 }
  0x2b   :  { %1161 = vmatpush3.bf16.msra.mxu1 %v1158_v27  ;;  %1257 = vmatpush3.bf16.msra.mxu0 %v1254_v24  ;;  %v280_v24 = vsub.f32 %v1621_v42, %v279_v43 }
  0x2c   :  { %1163 = vmatprep.subr.bf16.mxu1 %v1162_v62  ;;  %1259 = vmatprep.subr.bf16.mxu0 %v1258_v31 }
  0x2d   :  { %v281_v27 = vand.u32 4294901760, %v280_v24 }
  0x2f   :  { %1165 = vmatpush3.bf16.msra.mxu1 %v1162_v62  ;;  %1261 = vmatpush3.bf16.msra.mxu0 %v1258_v31  ;;  %v1182_v48 = vpack.c.bf16 %v288_v47, %v281_v27  ;;  %v1186_v31 = vpack.c.bf16 %v1476_v39, %v1474_v38  ;;  %v1194_v38 = vpack.c.bf16 %v1536_v59, %v1526_v55 }
  0x30   :  { %1167 = vmatprep.subr.bf16.mxu1 %v1166_v2  ;;  %1263 = vmatprep.subr.bf16.mxu0 %v1262_v36  ;;  %v1198_v39 = vpack.c.bf16 %v1557_v1, %v1552_v0 }
  0x33   :  { %1169 = vmatpush3.bf16.msra.mxu1 %v1166_v2  ;;  %1265 = vmatpush3.bf16.msra.mxu0 %v1262_v36 }
  0x34   :  { %1171 = vmatprep.subr.bf16.mxu1 %v1170_v15  ;;  %1267 = vmatprep.subr.bf16.mxu0 %v1266_v9 }
  0x37   :  { %1173 = vmatpush3.bf16.msra.mxu1 %v1170_v15  ;;  %1269 = vmatpush3.bf16.msra.mxu0 %v1266_v9 }
  0x38   :  { %1175 = vmatprep.subr.bf16.mxu1 %v1174_v44  ;;  %1271 = vmatprep.subr.bf16.mxu0 %v1270_v51 }
  0x3b   :  { %1177 = vmatpush3.bf16.msra.mxu1 %v1174_v44  ;;  %1273 = vmatpush3.bf16.msra.mxu0 %v1270_v51 }
  0x3c   :  { %1179 = vmatprep.subr.bf16.mxu1 %v1178_v32  ;;  %1275 = vmatprep.subr.bf16.mxu0 %v1274_v33 }
  0x3f   :  { %1181 = vmatpush3.bf16.msra.mxu1 %v1178_v32  ;;  %1277 = vmatpush3.bf16.msra.mxu0 %v1274_v33 }
  0x40   :  { %1183 = vmatprep.subr.bf16.mxu1 %v1182_v48  ;;  %1279 = vmatprep.subr.bf16.mxu0 %v1278_v28 }
  0x43   :  { %1185 = vmatpush3.bf16.msra.mxu1 %v1182_v48  ;;  %1281 = vmatpush3.bf16.msra.mxu0 %v1278_v28 }
  0x44   :  { %1187 = vmatprep.subr.bf16.mxu1 %v1186_v31  ;;  %1283 = vmatprep.subr.bf16.mxu0 %v1377_v10 }
  0x46   :  { %980 = vmatmul.mubr.f32.vlgmr.msra.gmra.mrb[0].mxu1 %v1478_v40  ;;  %1085 = vmatmul.mubr.f32.vlgmr.msra.gmra.mrb[0].mxu0 %v1478_v40 }
  0x47   :  { %1189 = vmatpush3.bf16.msra.mxu1 %v1186_v31  ;;  %1285 = vmatpush3.bf16.msra.mxu0 %v1377_v10  ;;  %v1202_v10 = vpack.c.bf16 %v1580_v20, %v1567_v8 }
  0x48   :  { %1191 = vmatprep.subr.bf16.mxu1 %v1190_v54  ;;  %1287 = vmatprep.subr.bf16.mxu0 %v1381_v13 }
  0x49   :  { %1014 = vmatprep.mubr.f32.mxu1 %v1423_v23  ;;  %1119 = vmatprep.mubr.f32.mxu0 %v1400_v17  ;;  %v1210_v17 = vpack.c.bf16 %v1610_v63, %v1602_v56  ;;  %v1331_v23 = vmov 0.0  }
  0x4a   :  { %51 = vst.msk [vmem:[%s1688_s3] sm:$0x1] %vm50_vm0, %v1331_v23 }
  0x4b   :  { %1193 = vmatpush3.bf16.msra.mxu1 %v1190_v54  ;;  %1289 = vmatpush3.bf16.msra.mxu0 %v1381_v13  ;;  %v1206_v13 = vpack.c.bf16 %v1595_v22, %v1586_v30 }
  0x4c   :  { %1195 = vmatprep.subr.bf16.mxu1 %v1194_v38  ;;  %1291 = vmatprep.subr.bf16.mxu0 %v1408_v18 }
  0x4f   :  { %1197 = vmatpush3.bf16.msra.mxu1 %v1194_v38  ;;  %1293 = vmatpush3.bf16.msra.mxu0 %v1408_v18  ;;  %v1214_v18 = vpack.c.bf16 %v1626_v7, %v1621_v42 }
  0x50   :  { %1199 = vmatprep.subr.bf16.mxu1 %v1198_v39  ;;  %1295 = vmatprep.subr.bf16.mxu0 %v1434_v25 }
  0x51   :  { %v779_v35 = vld [vmem:[%s1688_s3] sm:$0x1] }
  0x53   :  { %1201 = vmatpush3.bf16.msra.mxu1 %v1198_v39  ;;  %1297 = vmatpush3.bf16.msra.mxu0 %v1434_v25  ;;  %v803_v25 = vld [vmem:[%s1689_s2] ss:$0 sm:$0xff] }
  0x54   :  { %1203 = vmatprep.subr.bf16.mxu1 %v1202_v10  ;;  %1299 = vmatprep.subr.bf16.mxu0 %v1461_v34 }
  0x57   :  { %1205 = vmatpush3.bf16.msra.mxu1 %v1202_v10  ;;  %1301 = vmatpush3.bf16.msra.mxu0 %v1461_v34 }
  0x58   :  { %1207 = vmatprep.subr.bf16.mxu1 %v1206_v13  ;;  %1303 = vmatprep.subr.bf16.mxu0 %v1502_v46 }
  0x5b   :  { %1209 = vmatpush3.bf16.msra.mxu1 %v1206_v13  ;;  %1305 = vmatpush3.bf16.msra.mxu0 %v1502_v46 }
  0x5c   :  { %1211 = vmatprep.subr.bf16.mxu1 %v1210_v17  ;;  %1307 = vmatprep.subr.bf16.mxu0 %v1520_v53 }
  0x5f   :  { %1213 = vmatpush3.bf16.msra.mxu1 %v1210_v17  ;;  %1309 = vmatpush3.bf16.msra.mxu0 %v1520_v53 }
  0x60   :  { %1215 = vmatprep.subr.bf16.mxu1 %v1214_v18  ;;  %1311 = vmatprep.subr.bf16.mxu0 %v1542_v60 }
  0x63   :  { %1217 = vmatpush3.bf16.msra.mxu1 %v1214_v18  ;;  %1313 = vmatpush3.bf16.msra.mxu0 %v1542_v60 }
  0x66   :  { %1015 = vmatmul.mubr.f32.vlgmr.msra.gmra.mrb[0].mxu1 %v1512_v52  ;;  %1120 = vmatmul.mubr.f32.vlgmr.msra.gmra.mrb[0].mxu0 %v1478_v40 }
 0x139   :  { %v1016_v34 = vpop.f32.mrb[0].mxu1  ;;  %v1121_v45 = vpop.f32.mrb[0].mxu0 }
 0x13a   :  { %v1314_v46 = vadd.f32 %v1016_v34, %v803_v25  ;;  %v435_v49 = vpop.f32.mrb[1].mxu1  ;;  %v751_v53 = vpop.f32.mrb[1].mxu0 }
 0x13b   :  { %v1316_v55 = vadd.f32 %v803_v25, %v435_v49 }
 0x13c   :  { %v1315_v52 = vadd.f32 %v1314_v46, %v1121_v45 }
 0x13d   :  { %v1317_v59 = vadd.f32 %v1316_v55, %v751_v53 }
 0x13e   :  { %1327 = vtanh.f32 %v1315_v52 }
 0x13f   :  { %1329 = vtanh.f32 %v1317_v59 }
 0x148   :  { %v1328_v40 = vpop.eup %1327 }
 0x149   :  { %v1330_v60 = vpop.eup %1329  ;;  %v782_v0 = vsel %vm780_vm1, %v1328_v40, 0.0 }
 0x14a   :  { %v781_v1 = vsel %vm780_vm1, %v1330_v60, 0.0 }
 0x14b   :  { %v783_v8 = vadd.f32 %v782_v0, %v781_v1 }
 0x14d   :  { %v784_v20 = vrot.slane %v783_v8, 4 }
 0x14f   :  { %v785_v30 = vadd.f32 %v784_v20, %v783_v8 }
 0x151   :  { %v786_v22 = vrot.slane %v785_v30, 2 }
 0x153   :  { %v787_v56 = vadd.f32 %v786_v22, %v785_v30 }
 0x155   :  { %v788_v29 = vrot.slane %v787_v56, 1 }
 0x157   :  { %v789_v57 = vadd.f32 %v788_v29, %v787_v56 }
 0x159   :  { %v790_v58 = vadd.f32 %v789_v57, %v779_v35 }
 0x15b   :  { %792 = vst.msk [vmem:[%s1688_s3] sm:$0x1] %vm50_vm0, %v790_v58 }

// kernel: han_semantic_attention.3
= control target key start
LH: loop header
LB: loop body
LE: loop exit
PB: predicated region body
PF: predicated region fallthrough
CT: control target
= control target key end

     0   :  { %s1630_s0 = inlined_call_operand.vmem [shape: f32[16,128], index: 0, kind: input, shape index: {}]   ;;  %s1631_s1 = inlined_call_operand.vmem [shape: f32[128,32], index: 1, kind: input, shape index: {}]   ;;  %s1632_s2 = inlined_call_operand.hbm [shape: f32[16,32], index: 2, kind: output, shape index: {}]  }
   0x1   :  { %v14_v0 = vld [vmem:[%s1631_s1] sm:$0xff]  ;;  %v15_v1 = vld [vmem:[%s1631_s1 + $0x8] sm:$0xff]  ;;  %v16_v2 = vld [vmem:[%s1631_s1 + $0x10] sm:$0xff] }
   0x2   :  { %v31_v3 = vand.u32 4294901760, %v14_v0  ;;  %v34_v4 = vand.u32 4294901760, %v15_v1  ;;  %v1310_v5 = vld [vmem:[%s1631_s1 + $0x18] sm:$0xff]  ;;  %v37_v6 = vand.u32 4294901760, %v16_v2  ;;  %v1315_v7 = vld [vmem:[%s1631_s1 + $0x20] sm:$0xff]  ;;  %v1320_v8 = vld [vmem:[%s1631_s1 + $0x28] sm:$0xff] }
   0x3   :  { %v40_v9 = vand.u32 4294901760, %v1310_v5  ;;  %v43_v11 = vand.u32 4294901760, %v1315_v7  ;;  %v46_v12 = vand.u32 4294901760, %v1320_v8  ;;  %v1332_v14 = vld [vmem:[%s1631_s1 + $0x30] sm:$0xff]  ;;  %v1337_v15 = vld [vmem:[%s1631_s1 + $0x38] sm:$0xff]  ;;  %v12_v16 = vld [vmem:[%s1630_s0] sm:$0xff] }
   0x4   :  { %v1323_v10 = vpack.c.bf16 %v34_v4, %v31_v3  ;;  %v1346_v17 = vand.u32 4294901760, %v12_v16 }
   0x5   :  { %v1327_v13 = vpack.c.bf16 %v40_v9, %v37_v6 }
   0x6   :  { %1052 = vmatprep.subr.bf16.mxu1 %v1323_v10  ;;  %1148 = vmatprep.subr.bf16.mxu0 %v1323_v10 }
   0x7   :  { %1054 = vmatpush3.bf16.msra.mxu1 %v1323_v10  ;;  %1150 = vmatpush3.bf16.msra.mxu0 %v1323_v10 }
   0x8   :  { %7 = vsyncpa [#allocation3], 0  ;;  %1056 = vmatprep.subr.bf16.mxu1 %v1327_v13  ;;  %1152 = vmatprep.subr.bf16.mxu0 %v1327_v13  ;;  %v1354_v18 = vpack.c.bf16 %v46_v12, %v43_v11  ;;  %v49_v19 = vand.u32 4294901760, %v1332_v14  ;;  %v52_v20 = vand.u32 4294901760, %v1337_v15  ;;  %v1361_v21 = vld [vmem:[%s1631_s1 + $0x40] sm:$0xff]  ;;  %v1366_v22 = vld [vmem:[%s1631_s1 + $0x48] sm:$0xff]  ;;  %v1369_v23 = vsub.f32 %v12_v16, %v1346_v17 }
   0x9   :  { %v55_v26 = vand.u32 4294901760, %v1361_v21  ;;  %v58_v27 = vand.u32 4294901760, %v1366_v22  ;;  %v1387_v28 = vld [vmem:[%s1631_s1 + $0x50] sm:$0xff]  ;;  %v1392_v29 = vld [vmem:[%s1631_s1 + $0x58] sm:$0xff]  ;;  %v13_v33 = vld [vmem:[%s1630_s0 + $0x8] sm:$0xff]  ;;  %v1420_v38 = vsub.f32 %v14_v0, %v31_v3  ;;  %v1422_v39 = vsub.f32 %v15_v1, %v34_v4 }
   0xa   :  { %v113_v24 = vand.u32 4294901760, %v1369_v23  ;;  %v1380_v25 = vpack.c.bf16 %v52_v20, %v49_v19  ;;  %v61_v31 = vand.u32 4294901760, %v1387_v28  ;;  %v64_v35 = vand.u32 4294901760, %v1392_v29  ;;  %v1413_v36 = vld [vmem:[%s1631_s1 + $0x60] sm:$0xff]  ;;  %v1418_v37 = vld [vmem:[%s1631_s1 + $0x68] sm:$0xff]  ;;  %v1433_v43 = vld [vmem:[%s1631_s1 + $0x70] sm:$0xff] }
   0xb   :  { %1058 = vmatpush3.bf16.msra.mxu1 %v1327_v13  ;;  %1154 = vmatpush3.bf16.msra.mxu0 %v1327_v13  ;;  %v1407_v34 = vpack.c.bf16 %v58_v27, %v55_v26  ;;  %v1424_v40 = vand.u32 4294901760, %v13_v33  ;;  %v67_v41 = vand.u32 4294901760, %v1413_v36  ;;  %v70_v42 = vand.u32 4294901760, %v1418_v37  ;;  %v1438_v44 = vld [vmem:[%s1631_s1 + $0x78] sm:$0xff]  ;;  %s1280_s1 = smov [#allocation2]  }
   0xc   :  { %1060 = vmatprep.subr.bf16.mxu1 %v1354_v18  ;;  %1156 = vmatprep.subr.bf16.mxu0 %v1354_v18  ;;  %v114_v30 = vsub.f32 %v1369_v23, %v113_v24  ;;  %v1440_v45 = vsub.f32 %v16_v2, %v37_v6  ;;  %v1448_v46 = vpack.c.bf16 %v64_v35, %v61_v31  ;;  %v134_v47 = vand.u32 4294901760, %v1420_v38  ;;  %s722_s16 = sshll.u32 %s1280_s1, 4  ;;  %s723_s16 = int_to_ptr.vmem [resolvable:$true] %s722_s16 }
   0xd   :  { %978 = vmatprep.mubr.f32.mxu0 %v113_v24  ;;  %v141_v48 = vand.u32 4294901760, %v1422_v39  ;;  %v1453_v49 = vsub.f32 %v1310_v5, %v40_v9  ;;  %v73_v50 = vand.u32 4294901760, %v1433_v43  ;;  %v76_v51 = vand.u32 4294901760, %v1438_v44  ;;  %s1256_s17 = scalar_lea.vmem %s723_s16, 256  ;;  %p1261_p1 = scmp.lt.s32.totalorder %s723_s16, %s723_s16 }
   0xe   :  { %v115_v32 = vand.u32 4294901760, %v114_v30  ;;  %v1458_v52 = vsub.f32 %v13_v33, %v1424_v40  ;;  %v1466_v53 = vpack.c.bf16 %v70_v42, %v67_v41  ;;  %v148_v54 = vand.u32 4294901760, %v1440_v45  ;;  %p1257_p0 = scmp.ne.s32.totalorder %s723_s16, %s1256_s17  ;;  %p1262_p2 = scmp.lt.s32.totalorder %s1256_s17, %s1256_s17 }
   0xf   :  { %1062 = vmatpush3.bf16.msra.mxu1 %v1354_v18  ;;  %1158 = vmatpush3.bf16.msra.mxu0 %v1354_v18  ;;  %v1472_v55 = vsub.f32 %v1315_v7, %v43_v11  ;;  %v135_v56 = vsub.f32 %v1420_v38, %v134_v47  ;;  %v142_v57 = vsub.f32 %v1422_v39, %v141_v48  ;;  %v155_v58 = vand.u32 4294901760, %v1453_v49 }
  0x10   :  { %1064 = vmatprep.subr.bf16.mxu1 %v1380_v25  ;;  %1160 = vmatprep.subr.bf16.mxu0 %v1380_v25  ;;  %v1482_v59 = vsub.f32 %v1320_v8, %v46_v12  ;;  %v1488_v60 = vpack.c.bf16 %v76_v51, %v73_v50  ;;  %v123_v61 = vand.u32 4294901760, %v1458_v52  ;;  %v149_v62 = vsub.f32 %v1440_v45, %v148_v54  ;;  %p1263_p3 = por %p1262_p2, %p1261_p1 }
  0x11   :  { %873 = vmatprep.mubr.f32.mxu1 %v115_v32  ;;  %v162_v63 = vand.u32 4294901760, %v1472_v55  ;;  %v1498_v0 = vsub.f32 %v1332_v14, %v49_v19  ;;  %v1503_v1 = vsub.f32 %v1337_v15, %v52_v20  ;;  %v136_v2 = vand.u32 4294901760, %v135_v56 }
  0x12   :  { %v143_v3 = vand.u32 4294901760, %v142_v57  ;;  %v156_v4 = vsub.f32 %v1453_v49, %v155_v58  ;;  %v169_v5 = vand.u32 4294901760, %v1482_v59  ;;  %v1179_v6 = vpack.c.bf16 %v141_v48, %v134_v47  ;;  %p1264_p4 = pnand %p1263_p3, %p1257_p0 }
  0x13   :  { %1066 = vmatpush3.bf16.msra.mxu1 %v1380_v25  ;;  %1162 = vmatpush3.bf16.msra.mxu0 %v1380_v25  ;;  %v124_v7 = vsub.f32 %v1458_v52, %v123_v61  ;;  %v1513_v8 = vsub.f32 %v1361_v21, %v55_v26  ;;  %v150_v9 = vand.u32 4294901760, %v149_v62  ;;  %v163_v11 = vsub.f32 %v1472_v55, %v162_v63 }
  0x14   :  { %1068 = vmatprep.subr.bf16.mxu1 %v1407_v34  ;;  %1164 = vmatprep.subr.bf16.mxu0 %v1407_v34  ;;  %v176_v12 = vand.u32 4294901760, %v1498_v0  ;;  %v183_v14 = vand.u32 4294901760, %v1503_v1  ;;  %v1083_v15 = vpack.c.bf16 %v143_v3, %v136_v2  ;;  %v157_v16 = vand.u32 4294901760, %v156_v4 }
  0x15   :  { %v170_v19 = vsub.f32 %v1482_v59, %v169_v5  ;;  %v1526_v20 = vsub.f32 %v1366_v22, %v58_v27  ;;  %v125_v21 = vand.u32 4294901760, %v124_v7  ;;  %v1183_v24 = vpack.c.bf16 %v155_v58, %v148_v54 }
  0x16   :  { %v190_v26 = vand.u32 4294901760, %v1513_v8  ;;  %v1532_v30 = vsub.f32 %v1387_v28, %v61_v31  ;;  %v177_v32 = vsub.f32 %v1498_v0, %v176_v12  ;;  %v184_v33 = vsub.f32 %v1503_v1, %v183_v14 }
  0x17   :  { %1070 = vmatpush3.bf16.msra.mxu1 %v1407_v34  ;;  %1166 = vmatpush3.bf16.msra.mxu0 %v1407_v34  ;;  %v1541_v22 = vsub.f32 %v1392_v29, %v64_v35  ;;  %v1087_v27 = vpack.c.bf16 %v157_v16, %v150_v9  ;;  %v164_v47 = vand.u32 4294901760, %v163_v11  ;;  %v171_v48 = vand.u32 4294901760, %v170_v19 }
  0x18   :  { %1072 = vmatprep.subr.bf16.mxu1 %v1448_v46  ;;  %1168 = vmatprep.subr.bf16.mxu0 %v1448_v46  ;;  %v197_v28 = vand.u32 4294901760, %v1526_v20  ;;  %v1187_v31 = vpack.c.bf16 %v169_v5, %v162_v63  ;;  %v191_v54 = vsub.f32 %v1513_v8, %v190_v26  ;;  %v1548_v56 = vsub.f32 %v1413_v36, %v67_v41 }
  0x19   :  { %v178_v29 = vand.u32 4294901760, %v177_v32  ;;  %v185_v35 = vand.u32 4294901760, %v184_v33  ;;  %v204_v57 = vand.u32 4294901760, %v1532_v30  ;;  %v211_v58 = vand.u32 4294901760, %v1541_v22 }
  0x1a   :  { %v1091_v62 = vpack.c.bf16 %v171_v48, %v164_v47  ;;  %v1556_v63 = vsub.f32 %v1418_v37, %v70_v42  ;;  %v1191_v36 = vpack.c.bf16 %v183_v14, %v176_v12  ;;  %v192_v41 = vand.u32 4294901760, %v191_v54 }
  0x1b   :  { %1074 = vmatpush3.bf16.msra.mxu1 %v1448_v46  ;;  %1170 = vmatpush3.bf16.msra.mxu0 %v1448_v46  ;;  %v1095_v2 = vpack.c.bf16 %v185_v35, %v178_v29  ;;  %v205_v3 = vsub.f32 %v1532_v30, %v204_v57  ;;  %v212_v4 = vsub.f32 %v1541_v22, %v211_v58  ;;  %v218_v5 = vand.u32 4294901760, %v1548_v56 }
  0x1c   :  { %1076 = vmatprep.subr.bf16.mxu1 %v1466_v53  ;;  %1172 = vmatprep.subr.bf16.mxu0 %v1466_v53  ;;  %v225_v37 = vand.u32 4294901760, %v1556_v63  ;;  %v1567_v42 = vsub.f32 %v1433_v43, %v73_v50  ;;  %v1572_v7 = vsub.f32 %v1438_v44, %v76_v51  ;;  %v1195_v9 = vpack.c.bf16 %v197_v28, %v190_v26 }
  0x1d   :  { %v206_v11 = vand.u32 4294901760, %v205_v3  ;;  %v213_v12 = vand.u32 4294901760, %v212_v4  ;;  %v219_v14 = vsub.f32 %v1548_v56, %v218_v5  ;;  %v1199_v51 = vpack.c.bf16 %v211_v58, %v204_v57 }
  0x1e   :  { %v226_v16 = vsub.f32 %v1556_v63, %v225_v37  ;;  %v232_v43 = vand.u32 4294901760, %v1567_v42  ;;  %v239_v50 = vand.u32 4294901760, %v1572_v7  ;;  %v1203_v33 = vpack.c.bf16 %v225_v37, %v218_v5 }
  0x1f   :  { %1078 = vmatpush3.bf16.msra.mxu1 %v1466_v53  ;;  %1174 = vmatpush3.bf16.msra.mxu0 %v1466_v53  ;;  %v1103_v44 = vpack.c.bf16 %v213_v12, %v206_v11  ;;  %v220_v19 = vand.u32 4294901760, %v219_v14  ;;  %v1119_v54 = vpack.c.bf16 %v1453_v49, %v1440_v45  ;;  %vm714_vm0 = vcmask 261120  }
  0x20   :  { %1080 = vmatprep.subr.bf16.mxu1 %v1488_v60  ;;  %1176 = vmatprep.subr.bf16.mxu0 %v1488_v60  ;;  %v240_v26 = vsub.f32 %v1572_v7, %v239_v50 }
  0x22   :  { %v241_v47 = vand.u32 4294901760, %v240_v26 }
  0x23   :  { %1082 = vmatpush3.bf16.msra.mxu1 %v1488_v60  ;;  %1178 = vmatpush3.bf16.msra.mxu0 %v1488_v60 }
  0x24   :  { %1084 = vmatprep.subr.bf16.mxu1 %v1083_v15  ;;  %1180 = vmatprep.subr.bf16.mxu0 %v1179_v6 }
  0x26   :  { %874 = vmatmul.mubr.f32.vlgmr.msra.gmra.mrb[0].mxu1 %v125_v21  ;;  %979 = vmatmul.mubr.f32.vlgmr.msra.gmra.mrb[0].mxu0 %v123_v61  ;;  %v198_v61 = vsub.f32 %v1526_v20, %v197_v28  ;;  %v227_v21 = vand.u32 4294901760, %v226_v16  ;;  %v1207_v28 = vpack.c.bf16 %v239_v50, %v232_v43 }
  0x27   :  { %1086 = vmatpush3.bf16.msra.mxu1 %v1083_v15  ;;  %1182 = vmatpush3.bf16.msra.mxu0 %v1179_v6 }
  0x28   :  { %1088 = vmatprep.subr.bf16.mxu1 %v1087_v27  ;;  %1184 = vmatprep.subr.bf16.mxu0 %v1183_v24  ;;  %v199_v6 = vand.u32 4294901760, %v198_v61  ;;  %v1107_v32 = vpack.c.bf16 %v227_v21, %v220_v19 }
  0x29   :  { %908 = vmatprep.mubr.f32.mxu1 %v1346_v17  ;;  %1013 = vmatprep.mubr.f32.mxu0 %v1346_v17 }
  0x2a   :  { %v1099_v15 = vpack.c.bf16 %v199_v6, %v192_v41 }
  0x2b   :  { %1090 = vmatpush3.bf16.msra.mxu1 %v1087_v27  ;;  %1186 = vmatpush3.bf16.msra.mxu0 %v1183_v24  ;;  %v233_v24 = vsub.f32 %v1567_v42, %v232_v43 }
  0x2c   :  { %1092 = vmatprep.subr.bf16.mxu1 %v1091_v62  ;;  %1188 = vmatprep.subr.bf16.mxu0 %v1187_v31 }
  0x2d   :  { %v234_v27 = vand.u32 4294901760, %v233_v24 }
  0x2f   :  { %1094 = vmatpush3.bf16.msra.mxu1 %v1091_v62  ;;  %1190 = vmatpush3.bf16.msra.mxu0 %v1187_v31  ;;  %v1111_v48 = vpack.c.bf16 %v241_v47, %v234_v27  ;;  %v1115_v31 = vpack.c.bf16 %v1422_v39, %v1420_v38  ;;  %v1123_v38 = vpack.c.bf16 %v1482_v59, %v1472_v55 }
  0x30   :  { %1096 = vmatprep.subr.bf16.mxu1 %v1095_v2  ;;  %1192 = vmatprep.subr.bf16.mxu0 %v1191_v36  ;;  %v1127_v39 = vpack.c.bf16 %v1503_v1, %v1498_v0 }
  0x33   :  { %1098 = vmatpush3.bf16.msra.mxu1 %v1095_v2  ;;  %1194 = vmatpush3.bf16.msra.mxu0 %v1191_v36 }
  0x34   :  { %1100 = vmatprep.subr.bf16.mxu1 %v1099_v15  ;;  %1196 = vmatprep.subr.bf16.mxu0 %v1195_v9 }
  0x37   :  { %1102 = vmatpush3.bf16.msra.mxu1 %v1099_v15  ;;  %1198 = vmatpush3.bf16.msra.mxu0 %v1195_v9 }
  0x38   :  { %1104 = vmatprep.subr.bf16.mxu1 %v1103_v44  ;;  %1200 = vmatprep.subr.bf16.mxu0 %v1199_v51 }
  0x3b   :  { %1106 = vmatpush3.bf16.msra.mxu1 %v1103_v44  ;;  %1202 = vmatpush3.bf16.msra.mxu0 %v1199_v51 }
  0x3c   :  { %1108 = vmatprep.subr.bf16.mxu1 %v1107_v32  ;;  %1204 = vmatprep.subr.bf16.mxu0 %v1203_v33 }
  0x3f   :  { %1110 = vmatpush3.bf16.msra.mxu1 %v1107_v32  ;;  %1206 = vmatpush3.bf16.msra.mxu0 %v1203_v33 }
  0x40   :  { %1112 = vmatprep.subr.bf16.mxu1 %v1111_v48  ;;  %1208 = vmatprep.subr.bf16.mxu0 %v1207_v28 }
  0x43   :  { %1114 = vmatpush3.bf16.msra.mxu1 %v1111_v48  ;;  %1210 = vmatpush3.bf16.msra.mxu0 %v1207_v28 }
  0x44   :  { %1116 = vmatprep.subr.bf16.mxu1 %v1115_v31  ;;  %1212 = vmatprep.subr.bf16.mxu0 %v1323_v10 }
  0x46   :  { %909 = vmatmul.mubr.f32.vlgmr.msra.gmra.mrb[0].mxu1 %v1424_v40  ;;  %1014 = vmatmul.mubr.f32.vlgmr.msra.gmra.mrb[0].mxu0 %v1424_v40 }
  0x47   :  { %1118 = vmatpush3.bf16.msra.mxu1 %v1115_v31  ;;  %1214 = vmatpush3.bf16.msra.mxu0 %v1323_v10  ;;  %v1131_v10 = vpack.c.bf16 %v1526_v20, %v1513_v8 }
  0x48   :  { %1120 = vmatprep.subr.bf16.mxu1 %v1119_v54  ;;  %1216 = vmatprep.subr.bf16.mxu0 %v1327_v13 }
  0x49   :  { %943 = vmatprep.mubr.f32.mxu1 %v1369_v23  ;;  %1048 = vmatprep.mubr.f32.mxu0 %v1346_v17  ;;  %v1139_v17 = vpack.c.bf16 %v1556_v63, %v1548_v56 }
  0x4b   :  { %1122 = vmatpush3.bf16.msra.mxu1 %v1119_v54  ;;  %1218 = vmatpush3.bf16.msra.mxu0 %v1327_v13  ;;  %v1135_v13 = vpack.c.bf16 %v1541_v22, %v1532_v30 }
  0x4c   :  { %1124 = vmatprep.subr.bf16.mxu1 %v1123_v38  ;;  %1220 = vmatprep.subr.bf16.mxu0 %v1354_v18 }
  0x4f   :  { %1126 = vmatpush3.bf16.msra.mxu1 %v1123_v38  ;;  %1222 = vmatpush3.bf16.msra.mxu0 %v1354_v18  ;;  %v1143_v18 = vpack.c.bf16 %v1572_v7, %v1567_v42 }
  0x50   :  { %1128 = vmatprep.subr.bf16.mxu1 %v1127_v39  ;;  %1224 = vmatprep.subr.bf16.mxu0 %v1380_v25 }
  0x53   :  { %1130 = vmatpush3.bf16.msra.mxu1 %v1127_v39  ;;  %1226 = vmatpush3.bf16.msra.mxu0 %v1380_v25 }
  0x54   :  { %1132 = vmatprep.subr.bf16.mxu1 %v1131_v10  ;;  %1228 = vmatprep.subr.bf16.mxu0 %v1407_v34 }
  0x57   :  { %1134 = vmatpush3.bf16.msra.mxu1 %v1131_v10  ;;  %1230 = vmatpush3.bf16.msra.mxu0 %v1407_v34 }
  0x58   :  { %1136 = vmatprep.subr.bf16.mxu1 %v1135_v13  ;;  %1232 = vmatprep.subr.bf16.mxu0 %v1448_v46 }
  0x5b   :  { %1138 = vmatpush3.bf16.msra.mxu1 %v1135_v13  ;;  %1234 = vmatpush3.bf16.msra.mxu0 %v1448_v46 }
  0x5c   :  { %1140 = vmatprep.subr.bf16.mxu1 %v1139_v17  ;;  %1236 = vmatprep.subr.bf16.mxu0 %v1466_v53 }
  0x5f   :  { %1142 = vmatpush3.bf16.msra.mxu1 %v1139_v17  ;;  %1238 = vmatpush3.bf16.msra.mxu0 %v1466_v53 }
  0x60   :  { %1144 = vmatprep.subr.bf16.mxu1 %v1143_v18  ;;  %1240 = vmatprep.subr.bf16.mxu0 %v1488_v60 }
  0x63   :  { %1146 = vmatpush3.bf16.msra.mxu1 %v1143_v18  ;;  %1242 = vmatpush3.bf16.msra.mxu0 %v1488_v60 }
  0x66   :  { %944 = vmatmul.mubr.f32.vlgmr.msra.gmra.mrb[0].mxu1 %v1458_v52  ;;  %1049 = vmatmul.mubr.f32.vlgmr.msra.gmra.mrb[0].mxu0 %v1424_v40 }
 0x139   :  { %v945_v23 = vpop.f32.mrb[0].mxu1  ;;  %v1050_v25 = vpop.f32.mrb[0].mxu0 }
 0x13a   :  { %v1243_v34 = vadd.f32 %v1050_v25, %v945_v23  ;;  %v388_v45 = vpop.f32.mrb[1].mxu1  ;;  %v704_v46 = vpop.f32.mrb[1].mxu0 }
 0x13b   :  { %v1244_v49 = vadd.f32 %v704_v46, %v388_v45 }
 0x13c   :  { %716 = vst.msk [vmem:[#allocation2 + $0x8] sm:$0xff] %vm714_vm0, %v1243_v34 }
 0x13d   :  { %715 = vst.msk [vmem:[#allocation2] sm:$0xff] %vm714_vm0, %v1244_v49 }
 0x13e   :  { %1267 = shalt.err (!%p1264_p4)
}
 0x13f   :  { %s1268_s20 = scalar_lea.hbm %s1632_s2, 256 }
 0x140   :  { %p1269_p5 = scmp.ne.s32.totalorder %s1632_s2, %s1268_s20  ;;  %p1272_p6 = scmp.lt.u32.totalorder %s1268_s20, %s1632_s2 }
 0x142   :  { %p1274_p7 = pnand %p1272_p6, %p1269_p5 }
 0x144   :  { %1277 = shalt.err (!%p1274_p7)
}
 0x145   :  { %s1281_s25 = smov 128   ;;  %s1282_s26 = smov 8  }
 0x146   :  { %728 = dma.vmem_to_hbm [thread:$0]  %s723_s16, 256, %s1632_s2, [#allocation3], %s1281_s25, %s1281_s25, %s1282_s26  }
 0x147   :  { %1278 = dma.done.wait [#allocation3], 256  }
 0x148   :  { %1279 = vsyncadd [#allocation3], 4294967040 }
 0x149   :  { %732 = vsyncpa [#allocation3], 1 }

</bundles_post_ra>
